<compile_context>
chip_gen: v7x
topology: tpu7x:2x2x1
jax: 0.10.0
libtpu: 0.0.40
codegen_flags: <defaults>
</compile_context>

<pallas_src>
import jax
import jax.numpy as jnp
from jax.experimental import pallas as pl
from jax.experimental.pallas import tpu as pltpu

DIMS = (30, 16, 18, 20, 24, 2)   # input_dim=30, hidden 16/18/20/24, output_dim=2
DROP_P = 0.25
OUT_PAD = 128                    # lane-dense padded output width


def _round_up(n, m):
    return ((n + m - 1) // m) * m


def dqn_kernel(x_ref, mask_ref,
               w1_ref, b1_ref,
               w2_ref, b2_ref,
               w3_ref, b3_ref,
               w4_ref, b4_ref,
               w5_ref, b5_ref,
               o_ref):
    x = x_ref[...]

    # fc1 + relu
    h = jnp.maximum(
        jnp.dot(x, w1_ref[...], preferred_element_type=jnp.float32) + b1_ref[...],
        0.0)
    # fc2 + relu
    h = jnp.maximum(
        jnp.dot(h, w2_ref[...], preferred_element_type=jnp.float32) + b2_ref[...],
        0.0)

    # dropout(p=0.25), training mode (F.dropout default). mask is {0,1};
    # the 1/(1-p) rescale is already folded into w3 -> one multiply here.
    h = h * mask_ref[...]

    # fc3 + relu  (w3 pre-scaled by 1/(1-p))
    h = jnp.maximum(
        jnp.dot(h, w3_ref[...], preferred_element_type=jnp.float32) + b3_ref[...],
        0.0)
    # fc4 + relu
    h = jnp.maximum(
        jnp.dot(h, w4_ref[...], preferred_element_type=jnp.float32) + b4_ref[...],
        0.0)
    # fc5 + sigmoid, computed on a 128-lane padded slab (lane-dense store).
    logits = jnp.dot(h, w5_ref[...], preferred_element_type=jnp.float32) + b5_ref[...]
    o_ref[...] = jax.nn.sigmoid(logits)


def dqn_forward(x, params, dropout_key, tb=512):
    """x: [B, 30] float32; params: list of 5 (W[in,out], b[1,out]) tuples."""
    B = x.shape[0]
    TB = min(tb, _round_up(B, 8))        # batch tile (sublane-aligned)
    Bp = _round_up(B, TB)                # padded batch, multiple of TB
    if Bp != B:
        x = jnp.pad(x, ((0, Bp - B), (0, 0)))

    # Training-mode dropout mask for the fc2 output (one row per batch row).
    keep = jax.random.bernoulli(dropout_key, 1.0 - DROP_P,
                                (Bp, DIMS[2])).astype(jnp.float32)

    # Host-side weight preprocessing.
    (w1, b1), (w2, b2), (w3, b3), (w4, b4), (w5, b5) = params
    w3s = w3 * (1.0 / (1.0 - DROP_P))                              # fold rescale
    w5p = jnp.zeros((DIMS[4], OUT_PAD), jnp.float32).at[:, :DIMS[5]].set(w5)
    b5p = jnp.zeros((1, OUT_PAD), jnp.float32).at[:, :DIMS[5]].set(b5)
    flat = [w1, b1, w2, b2, w3s, b3, w4, b4, w5p, b5p]

    grid = (Bp // TB,)
    # Weights/biases: full-array blocks, same block every step -> VMEM-resident.
    resident = lambda a: pl.BlockSpec(a.shape, lambda i: (0, 0))

    # TODO(synk): for very large batches, a transposed (batch-on-lanes) mapping
    # would raise MXU occupancy for these tiny (<=30-wide) contractions.
    out = pl.pallas_call(
        dqn_kernel,
        out_shape=jax.ShapeDtypeStruct((Bp, OUT_PAD), jnp.float32),
        grid=grid,
        in_specs=[
            pl.BlockSpec((TB, DIMS[0]), lambda i: (i, 0)),   # x tile
            pl.BlockSpec((TB, DIMS[2]), lambda i: (i, 0)),   # dropout-mask tile
        ] + [resident(a) for a in flat],
        out_specs=pl.BlockSpec((TB, OUT_PAD), lambda i: (i, 0)),
        compiler_params=pltpu.CompilerParams(
            dimension_semantics=("parallel",)),
    )(x, keep, *flat)

    return out[:B, :DIMS[-1]]


def init_params(key):
    """Deterministic init matching nn.Linear defaults: U(-1/sqrt(fan_in), +)."""
    params = []
    keys = jax.random.split(key, 2 * (len(DIMS) - 1))
    for i in range(len(DIMS) - 1):
        fan_in, fan_out = DIMS[i], DIMS[i + 1]
        bound = 1.0 / (fan_in ** 0.5)
        w = jax.random.uniform(keys[2 * i], (fan_in, fan_out),
                               jnp.float32, -bound, bound)
        b = jax.random.uniform(keys[2 * i + 1], (1, fan_out),
                               jnp.float32, -bound, bound)
        params.append((w, b))
    return params


if __name__ == "__main__":
    root = jax.random.PRNGKey(0)
    pkey, xkey, dkey = jax.random.split(root, 3)

    params = init_params(pkey)
    batch = 8
    x = jax.random.normal(xkey, (batch, DIMS[0]), jnp.float32)

    out = jax.block_until_ready(dqn_forward(x, params, dkey))

    assert out.shape == (batch, DIMS[-1]), out.shape
    assert bool(jnp.all((out >= 0.0) & (out <= 1.0)))  # sigmoid range
    print("KERNEL_OK")
</pallas_src>

<mosaic_0001>
module attributes {stable_mosaic.version = 11 : i64} {
  func.func @dqn_kernel(%arg0: i32, %arg1: memref<8x30xf32, #tpu.memory_space<vmem>>, %arg2: memref<8x18xf32, #tpu.memory_space<vmem>>, %arg3: memref<30x16xf32, #tpu.memory_space<vmem>>, %arg4: memref<1x16xf32, #tpu.memory_space<vmem>>, %arg5: memref<16x18xf32, #tpu.memory_space<vmem>>, %arg6: memref<1x18xf32, #tpu.memory_space<vmem>>, %arg7: memref<18x20xf32, #tpu.memory_space<vmem>>, %arg8: memref<1x20xf32, #tpu.memory_space<vmem>>, %arg9: memref<20x24xf32, #tpu.memory_space<vmem>>, %arg10: memref<1x24xf32, #tpu.memory_space<vmem>>, %arg11: memref<24x128xf32, #tpu.memory_space<vmem>>, %arg12: memref<1x128xf32, #tpu.memory_space<vmem>>, %arg13: memref<8x128xf32, #tpu.memory_space<vmem>>) attributes {dimension_semantics = [#tpu.dimension_semantics<parallel>], iteration_bounds = array<i64: 1>, scalar_prefetch = 0 : i64, scratch_operands = 0 : i64, tpu.core_type = #tpu.core_type<tc>, window_params = [{transform_indices = @transform_0, window_bounds = array<i64: 8, 30>}, {transform_indices = @transform_1, window_bounds = array<i64: 8, 18>}, {pipeline_mode = #tpu.pipeline_mode<synchronous>, transform_indices = @transform_2, window_bounds = array<i64: 30, 16>}, {pipeline_mode = #tpu.pipeline_mode<synchronous>, transform_indices = @transform_3, window_bounds = array<i64: 1, 16>}, {pipeline_mode = #tpu.pipeline_mode<synchronous>, transform_indices = @transform_4, window_bounds = array<i64: 16, 18>}, {pipeline_mode = #tpu.pipeline_mode<synchronous>, transform_indices = @transform_5, window_bounds = array<i64: 1, 18>}, {pipeline_mode = #tpu.pipeline_mode<synchronous>, transform_indices = @transform_6, window_bounds = array<i64: 18, 20>}, {pipeline_mode = #tpu.pipeline_mode<synchronous>, transform_indices = @transform_7, window_bounds = array<i64: 1, 20>}, {pipeline_mode = #tpu.pipeline_mode<synchronous>, transform_indices = @transform_8, window_bounds = array<i64: 20, 24>}, {pipeline_mode = #tpu.pipeline_mode<synchronous>, transform_indices = @transform_9, window_bounds = array<i64: 1, 24>}, {pipeline_mode = #tpu.pipeline_mode<synchronous>, transform_indices = @transform_10, window_bounds = array<i64: 24, 128>}, {pipeline_mode = #tpu.pipeline_mode<synchronous>, transform_indices = @transform_11, window_bounds = array<i64: 1, 128>}, {transform_indices = @transform_12, window_bounds = array<i64: 8, 128>}]} {
    %c0 = arith.constant 0 : index
    %c0_0 = arith.constant 0 : index
    %0 = vector.load %arg1[%c0, %c0_0] : memref<8x30xf32, #tpu.memory_space<vmem>>, vector<8x30xf32>
    %c0_1 = arith.constant 0 : index
    %c0_2 = arith.constant 0 : index
    %1 = vector.load %arg3[%c0_1, %c0_2] : memref<30x16xf32, #tpu.memory_space<vmem>>, vector<30x16xf32>
    %cst = arith.constant dense<0.000000e+00> : vector<8x16xf32>
    %2 = tpu.matmul %0, %1, %cst {dimension_numbers = #tpu.dot_dimension_numbers<[1], [0], [0], [1], [0, 0, 1, 1], [], []>} : vector<8x30xf32>, vector<30x16xf32>, vector<8x16xf32> -> vector<8x16xf32>
    %c0_3 = arith.constant 0 : index
    %c0_4 = arith.constant 0 : index
    %3 = vector.load %arg4[%c0_3, %c0_4] : memref<1x16xf32, #tpu.memory_space<vmem>>, vector<1x16xf32>
    %4 = vector.broadcast %3 : vector<1x16xf32> to vector<8x16xf32>
    %5 = arith.addf %2, %4 : vector<8x16xf32>
    %cst_5 = arith.constant 0.000000e+00 : f32
    %6 = vector.broadcast %cst_5 : f32 to vector<8x16xf32>
    %7 = arith.maximumf %5, %6 : vector<8x16xf32>
    %c0_6 = arith.constant 0 : index
    %c0_7 = arith.constant 0 : index
    %8 = vector.load %arg5[%c0_6, %c0_7] : memref<16x18xf32, #tpu.memory_space<vmem>>, vector<16x18xf32>
    %cst_8 = arith.constant dense<0.000000e+00> : vector<8x18xf32>
    %9 = tpu.matmul %7, %8, %cst_8 {dimension_numbers = #tpu.dot_dimension_numbers<[1], [0], [0], [1], [0, 0, 1, 1], [], []>} : vector<8x16xf32>, vector<16x18xf32>, vector<8x18xf32> -> vector<8x18xf32>
    %c0_9 = arith.constant 0 : index
    %c0_10 = arith.constant 0 : index
    %10 = vector.load %arg6[%c0_9, %c0_10] : memref<1x18xf32, #tpu.memory_space<vmem>>, vector<1x18xf32>
    %11 = vector.broadcast %10 : vector<1x18xf32> to vector<8x18xf32>
    %12 = arith.addf %9, %11 : vector<8x18xf32>
    %cst_11 = arith.constant 0.000000e+00 : f32
    %13 = vector.broadcast %cst_11 : f32 to vector<8x18xf32>
    %14 = arith.maximumf %12, %13 : vector<8x18xf32>
    %c0_12 = arith.constant 0 : index
    %c0_13 = arith.constant 0 : index
    %15 = vector.load %arg2[%c0_12, %c0_13] : memref<8x18xf32, #tpu.memory_space<vmem>>, vector<8x18xf32>
    %16 = arith.mulf %14, %15 : vector<8x18xf32>
    %c0_14 = arith.constant 0 : index
    %c0_15 = arith.constant 0 : index
    %17 = vector.load %arg7[%c0_14, %c0_15] : memref<18x20xf32, #tpu.memory_space<vmem>>, vector<18x20xf32>
    %cst_16 = arith.constant dense<0.000000e+00> : vector<8x20xf32>
    %18 = tpu.matmul %16, %17, %cst_16 {dimension_numbers = #tpu.dot_dimension_numbers<[1], [0], [0], [1], [0, 0, 1, 1], [], []>} : vector<8x18xf32>, vector<18x20xf32>, vector<8x20xf32> -> vector<8x20xf32>
    %c0_17 = arith.constant 0 : index
    %c0_18 = arith.constant 0 : index
    %19 = vector.load %arg8[%c0_17, %c0_18] : memref<1x20xf32, #tpu.memory_space<vmem>>, vector<1x20xf32>
    %20 = vector.broadcast %19 : vector<1x20xf32> to vector<8x20xf32>
    %21 = arith.addf %18, %20 : vector<8x20xf32>
    %cst_19 = arith.constant 0.000000e+00 : f32
    %22 = vector.broadcast %cst_19 : f32 to vector<8x20xf32>
    %23 = arith.maximumf %21, %22 : vector<8x20xf32>
    %c0_20 = arith.constant 0 : index
    %c0_21 = arith.constant 0 : index
    %24 = vector.load %arg9[%c0_20, %c0_21] : memref<20x24xf32, #tpu.memory_space<vmem>>, vector<20x24xf32>
    %cst_22 = arith.constant dense<0.000000e+00> : vector<8x24xf32>
    %25 = tpu.matmul %23, %24, %cst_22 {dimension_numbers = #tpu.dot_dimension_numbers<[1], [0], [0], [1], [0, 0, 1, 1], [], []>} : vector<8x20xf32>, vector<20x24xf32>, vector<8x24xf32> -> vector<8x24xf32>
    %c0_23 = arith.constant 0 : index
    %c0_24 = arith.constant 0 : index
    %26 = vector.load %arg10[%c0_23, %c0_24] : memref<1x24xf32, #tpu.memory_space<vmem>>, vector<1x24xf32>
    %27 = vector.broadcast %26 : vector<1x24xf32> to vector<8x24xf32>
    %28 = arith.addf %25, %27 : vector<8x24xf32>
    %cst_25 = arith.constant 0.000000e+00 : f32
    %29 = vector.broadcast %cst_25 : f32 to vector<8x24xf32>
    %30 = arith.maximumf %28, %29 : vector<8x24xf32>
    %c0_26 = arith.constant 0 : index
    %c0_27 = arith.constant 0 : index
    %31 = vector.load %arg11[%c0_26, %c0_27] : memref<24x128xf32, #tpu.memory_space<vmem>>, vector<24x128xf32>
    %cst_28 = arith.constant dense<0.000000e+00> : vector<8x128xf32>
    %32 = tpu.matmul %30, %31, %cst_28 {dimension_numbers = #tpu.dot_dimension_numbers<[1], [0], [0], [1], [0, 0, 1, 1], [], []>} : vector<8x24xf32>, vector<24x128xf32>, vector<8x128xf32> -> vector<8x128xf32>
    %c0_29 = arith.constant 0 : index
    %c0_30 = arith.constant 0 : index
    %33 = vector.load %arg12[%c0_29, %c0_30] : memref<1x128xf32, #tpu.memory_space<vmem>>, vector<1x128xf32>
    %34 = vector.broadcast %33 : vector<1x128xf32> to vector<8x128xf32>
    %35 = arith.addf %32, %34 : vector<8x128xf32>
    %36 = arith.negf %35 : vector<8x128xf32>
    %37 = math.exp %36 : vector<8x128xf32>
    %cst_31 = arith.constant 1.000000e+00 : f32
    %38 = vector.broadcast %cst_31 : f32 to vector<8x128xf32>
    %39 = arith.addf %38, %37 : vector<8x128xf32>
    %40 = arith.divf %38, %39 : vector<8x128xf32>
    %c0_32 = arith.constant 0 : index
    %c0_33 = arith.constant 0 : index
    %41 = vector.load %arg13[%c0_32, %c0_33] : memref<8x128xf32, #tpu.memory_space<vmem>>, vector<8x128xf32>
    tpu.vector_store %arg13[%c0_32, %c0_33], %40 {strides = array<i32>} : memref<8x128xf32, #tpu.memory_space<vmem>>, vector<8x128xf32>,
    return
  }
  func.func @transform_0(%arg0: i32) -> (i32, i32) {
    %c0_i32 = arith.constant 0 : i32
    %c0_i32_0 = arith.constant 0 : i32
    return %arg0, %c0_i32 : i32, i32
  }
  func.func @transform_1(%arg0: i32) -> (i32, i32) {
    %c0_i32 = arith.constant 0 : i32
    %c0_i32_0 = arith.constant 0 : i32
    return %arg0, %c0_i32 : i32, i32
  }
  func.func @transform_2(%arg0: i32) -> (i32, i32) {
    %c0_i32 = arith.constant 0 : i32
    %c0_i32_0 = arith.constant 0 : i32
    %c0_i32_1 = arith.constant 0 : i32
    return %c0_i32, %c0_i32_0 : i32, i32
  }
  func.func @transform_3(%arg0: i32) -> (i32, i32) {
    %c0_i32 = arith.constant 0 : i32
    %c0_i32_0 = arith.constant 0 : i32
    %c0_i32_1 = arith.constant 0 : i32
    return %c0_i32, %c0_i32_0 : i32, i32
  }
  func.func @transform_4(%arg0: i32) -> (i32, i32) {
    %c0_i32 = arith.constant 0 : i32
    %c0_i32_0 = arith.constant 0 : i32
    %c0_i32_1 = arith.constant 0 : i32
    return %c0_i32, %c0_i32_0 : i32, i32
  }
  func.func @transform_5(%arg0: i32) -> (i32, i32) {
    %c0_i32 = arith.constant 0 : i32
    %c0_i32_0 = arith.constant 0 : i32
    %c0_i32_1 = arith.constant 0 : i32
    return %c0_i32, %c0_i32_0 : i32, i32
  }
  func.func @transform_6(%arg0: i32) -> (i32, i32) {
    %c0_i32 = arith.constant 0 : i32
    %c0_i32_0 = arith.constant 0 : i32
    %c0_i32_1 = arith.constant 0 : i32
    return %c0_i32, %c0_i32_0 : i32, i32
  }
  func.func @transform_7(%arg0: i32) -> (i32, i32) {
    %c0_i32 = arith.constant 0 : i32
    %c0_i32_0 = arith.constant 0 : i32
    %c0_i32_1 = arith.constant 0 : i32
    return %c0_i32, %c0_i32_0 : i32, i32
  }
  func.func @transform_8(%arg0: i32) -> (i32, i32) {
    %c0_i32 = arith.constant 0 : i32
    %c0_i32_0 = arith.constant 0 : i32
    %c0_i32_1 = arith.constant 0 : i32
    return %c0_i32, %c0_i32_0 : i32, i32
  }
  func.func @transform_9(%arg0: i32) -> (i32, i32) {
    %c0_i32 = arith.constant 0 : i32
    %c0_i32_0 = arith.constant 0 : i32
    %c0_i32_1 = arith.constant 0 : i32
    return %c0_i32, %c0_i32_0 : i32, i32
  }
  func.func @transform_10(%arg0: i32) -> (i32, i32) {
    %c0_i32 = arith.constant 0 : i32
    %c0_i32_0 = arith.constant 0 : i32
    %c0_i32_1 = arith.constant 0 : i32
    return %c0_i32, %c0_i32_0 : i32, i32
  }
  func.func @transform_11(%arg0: i32) -> (i32, i32) {
    %c0_i32 = arith.constant 0 : i32
    %c0_i32_0 = arith.constant 0 : i32
    %c0_i32_1 = arith.constant 0 : i32
    return %c0_i32, %c0_i32_0 : i32, i32
  }
  func.func @transform_12(%arg0: i32) -> (i32, i32) {
    %c0_i32 = arith.constant 0 : i32
    %c0_i32_0 = arith.constant 0 : i32
    return %arg0, %c0_i32 : i32, i32
  }
}

</mosaic_0001>

<bundles_post_ra>
// kernel: tpu_custom_call.1
= control target key start
LH: loop header
LB: loop body
LE: loop exit
PB: predicated region body
PF: predicated region fallthrough
CT: control target
= control target key end

     0   :  { %17 = vsyncpa [#allocation3], 0  ;;  %s985_s0 = inlined_call_operand.hbm [shape: f32[8,30], index: 0, kind: input, shape index: {}]   ;;  %s986_s1 = inlined_call_operand.hbm [shape: f32[8,18], index: 1, kind: input, shape index: {}]   ;;  %s987_s2 = inlined_call_operand.vmem [shape: f32[30,16], index: 2, kind: input, shape index: {}]   ;;  %s988_s3 = inlined_call_operand.vmem [shape: f32[1,16], index: 3, kind: input, shape index: {}]   ;;  %s989_s4 = inlined_call_operand.hbm [shape: f32[16,18], index: 4, kind: input, shape index: {}]   ;;  %s990_s5 = inlined_call_operand.vmem [shape: f32[1,18], index: 5, kind: input, shape index: {}]   ;;  %s991_s6 = inlined_call_operand.vmem [shape: f32[18,20], index: 6, kind: input, shape index: {}]   ;;  %s992_s7 = inlined_call_operand.hbm [shape: f32[1,20], index: 7, kind: input, shape index: {}]   ;;  %s993_s8 = inlined_call_operand.vmem [shape: f32[20,24], index: 8, kind: input, shape index: {}]   ;;  %s994_s9 = inlined_call_operand.vmem [shape: f32[1,24], index: 9, kind: input, shape index: {}]   ;;  %s995_s10 = inlined_call_operand.vmem [shape: f32[24,128], index: 10, kind: input, shape index: {}]   ;;  %s996_s11 = inlined_call_operand.vmem [shape: f32[1,128], index: 11, kind: input, shape index: {}]   ;;  %s997_s12 = inlined_call_operand.hbm [shape: f32[8,128], index: 12, kind: output, shape index: {}]  }
   0x1   :  { %18 = vsyncpa [#allocation6], 0 }
   0x2   :  { %19 = vsyncpa [#allocation9], 0 }
   0x3   :  { %20 = vsyncpa [#allocation4], 0  ;;  %s785_s21 = smov [#allocation5]   ;;  %s786_s23 = smov [#allocation2]  }
   0x4   :  { %s37_s22 = sshll.u32 %s785_s21, 4  ;;  %s27_s24 = sshll.u32 %s786_s23, 4  ;;  %s38_s22 = int_to_ptr.vmem [resolvable:$true] %s37_s22  ;;  %s28_s24 = int_to_ptr.vmem [resolvable:$true] %s27_s24 }
   0x5   :  { %s667_s27 = scalar_lea.hbm %s986_s1, 128 }
   0x6   :  { %p668_p0 = scmp.ne.s32.totalorder %s986_s1, %s667_s27  ;;  %p671_p1 = scmp.lt.u32.totalorder %s667_s27, %s986_s1 }
   0x8   :  { %p673_p2 = pnand %p671_p1, %p668_p0 }
   0xa   :  { %676 = shalt.err (!%p673_p2)
}
   0xb   :  { %s677_s14 = scalar_lea.vmem %s38_s22, 128  ;;  %p682_p4 = scmp.lt.s32.totalorder %s38_s22, %s38_s22 }
   0xc   :  { %p678_p3 = scmp.ne.s32.totalorder %s38_s22, %s677_s14  ;;  %p683_p5 = scmp.lt.s32.totalorder %s677_s14, %s677_s14 }
   0xe   :  { %p684_p6 = por %p683_p5, %p682_p4 }
  0x10   :  { %p685_p7 = pnand %p684_p6, %p678_p3 }
  0x12   :  { %688 = shalt.err (!%p685_p7)
}
  0x13   :  { %40 = dma.hbm_to_vmem [thread:$0]  %s986_s1, 128, %s38_s22, [#allocation6]  }
  0x14   :  { %s689_s19 = scalar_lea.hbm %s985_s0, 128 }
  0x15   :  { %p690_p8 = scmp.ne.s32.totalorder %s985_s0, %s689_s19  ;;  %p693_p9 = scmp.lt.u32.totalorder %s689_s19, %s985_s0 }
  0x17   :  { %p695_p10 = pnand %p693_p9, %p690_p8 }
  0x19   :  { %698 = shalt.err (!%p695_p10)
}
  0x1a   :  { %s699_s26 = scalar_lea.vmem %s28_s24, 128  ;;  %p704_p12 = scmp.lt.s32.totalorder %s28_s24, %s28_s24 }
  0x1b   :  { %p700_p11 = scmp.ne.s32.totalorder %s28_s24, %s699_s26  ;;  %p705_p13 = scmp.lt.s32.totalorder %s699_s26, %s699_s26 }
  0x1d   :  { %p706_p0 = por %p705_p13, %p704_p12 }
  0x1f   :  { %p707_p1 = pnand %p706_p0, %p700_p11 }
  0x21   :  { %710 = shalt.err (!%p707_p1)
}
  0x22   :  { %30 = dma.hbm_to_vmem [thread:$0]  %s985_s0, 128, %s28_s24, [#allocation3]  }
  0x23   :  { %s787_s27 = smov [#allocation7]   ;;  %s711_s13 = scalar_lea.hbm %s989_s4, 256 }
  0x24   :  { %s50_s28 = sshll.u32 %s787_s27, 4  ;;  %p712_p2 = scmp.ne.s32.totalorder %s989_s4, %s711_s13  ;;  %s51_s28 = int_to_ptr.vmem [resolvable:$true] %s50_s28 }
  0x25   :  { %p715_p3 = scmp.lt.u32.totalorder %s711_s13, %s989_s4 }
  0x27   :  { %p717_p4 = pnand %p715_p3, %p712_p2 }
  0x29   :  { %720 = shalt.err (!%p717_p4)
}
  0x2a   :  { %s721_s18 = scalar_lea.vmem %s51_s28, 256  ;;  %p726_p6 = scmp.lt.s32.totalorder %s51_s28, %s51_s28 }
  0x2b   :  { %p722_p5 = scmp.ne.s32.totalorder %s51_s28, %s721_s18  ;;  %p727_p7 = scmp.lt.s32.totalorder %s721_s18, %s721_s18 }
  0x2d   :  { %p728_p8 = por %p727_p7, %p726_p6 }
  0x2f   :  { %p729_p9 = pnand %p728_p8, %p722_p5 }
  0x31   :  { %732 = shalt.err (!%p729_p9)
}
  0x32   :  { %s788_s0 = smov 128   ;;  %s789_s24 = smov 8  }
  0x33   :  { %56 = dma.hbm_to_vmem [thread:$0]  %s989_s4, 256, %s51_s28, [#allocation6], %s788_s0, %s788_s0, %s789_s24  }
  0x34   :  { %s790_s21 = smov [#allocation8]   ;;  %s733_s1 = scalar_lea.hbm %s992_s7, 16 }
  0x35   :  { %s67_s23 = sshll.u32 %s790_s21, 4  ;;  %p734_p10 = scmp.ne.s32.totalorder %s992_s7, %s733_s1  ;;  %s68_s23 = int_to_ptr.vmem [resolvable:$true] %s67_s23 }
  0x36   :  { %p737_p11 = scmp.lt.u32.totalorder %s733_s1, %s992_s7 }
  0x38   :  { %p739_p12 = pnand %p737_p11, %p734_p10 }
  0x3a   :  { %742 = shalt.err (!%p739_p12)
}
  0x3b   :  { %s743_s13 = scalar_lea.vmem %s68_s23, 16  ;;  %s747_s4 = scalar_lea.vmem %s68_s23, 32 }
  0x3c   :  { %p744_p13 = scmp.ne.s32.totalorder %s68_s23, %s743_s13  ;;  %p748_p0 = scmp.lt.s32.totalorder %s68_s23, %s68_s23 }
  0x3d   :  { %p749_p1 = scmp.lt.s32.totalorder %s747_s4, %s743_s13 }
  0x3f   :  { %p750_p2 = por %p749_p1, %p748_p0 }
  0x41   :  { %p751_p3 = pnand %p750_p2, %p744_p13 }
  0x43   :  { %754 = shalt.err (!%p751_p3)
}
  0x44   :  { %70 = dma.hbm_to_vmem [thread:$0]  %s992_s7, 16, %s68_s23, [#allocation9]  }
  0x45   :  { %777 = dma.done.wait [#allocation3], 128  }
  0x46   :  { %778 = vsyncadd [#allocation3], 4294967168 }
  0x47   :  { %779 = dma.done.wait [#allocation6], 384  }
  0x48   :  { %780 = vsyncadd [#allocation6], 4294966912 }
  0x49   :  { %781 = dma.done.wait [#allocation9], 16  }
  0x4a   :  { %782 = vsyncadd [#allocation9], 4294967280  ;;  %v791_v0 = vmov 0.0|0.0   ;;  %vm792_vm0 = vmmov 0   ;;  %v793_v1 = vmov 0.0   ;;  %v92_v2 = vld [vmem:[%s987_s2] sm:$0xff] }
  0x4b   :  { %633 = vmatprep.subr.bf16.mxu0 %v791_v0  ;;  %640 = vmatprep.subr.bf16.mxu1 %v791_v0  ;;  %v93_v3 = vld [vmem:[%s987_s2 + $0x8] sm:$0xff]  ;;  %v94_v4 = vld [vmem:[%s987_s2 + $0x10] sm:$0xff]  ;;  %v95_v6 = vld [vmem:[%s987_s2 + $0x18] sm:$0x3f]  ;;  %vm107_vm1 = vcmask 1045504   ;;  %vm794_vm2 = vmmov 1  }
  0x4c   :  { %596 = vmatprep.mubr.msk.f32.mxu0 %vm792_vm0, %v793_v1  ;;  %603 = vmatprep.mubr.msk.f32.mxu1 %vm792_vm0, %v793_v1  ;;  %v634_v5 = vpack.c.bf16 %v93_v3, %v92_v2  ;;  %v637_v7 = vpack.c.bf16 %v95_v6, %v94_v4  ;;  %vm638_vm3 = vmpackc.low %vm107_vm1, %vm794_vm2  ;;  %v91_v8 = vld [vmem:[#allocation2] sm:$0xff]  ;;  %vm103_vm4 = vcmask 244736   ;;  %v182_v9 = vld [vmem:[#allocation7] sm:$0xff]  ;;  %vm191_vm5 = vcmask 130048  }
  0x4d   :  { %v183_v10 = vld [vmem:[#allocation7 + $0x8] sm:$0xff]  ;;  %v554_v12 = vld [vmem:[%s988_s3] ss:$0 sm:$0xff]  ;;  %v269_v18 = vld [vmem:[%s991_s6 + $0x8] sm:$0xff]  ;;  %vm282_vm6 = vcmask 1041408   ;;  %vm278_vm7 = vcmask 146432  }
  0x4e   :  { %635 = vmatpush3.bf16.msra.mxu0 %v634_v5  ;;  %v641_v11 = vpack.c.bf16 %v183_v10, %v182_v9  ;;  %v268_v17 = vld [vmem:[%s991_s6] sm:$0xff]  ;;  %v270_v20 = vld [vmem:[%s991_s6 + $0x10] sm:$0x3]  ;;  %v358_v22 = vld [vmem:[%s993_s8 + $0x8] sm:$0xff]  ;;  %vm371_vm8 = vcmask 1043456   ;;  %vm367_vm9 = vcmask 162816  }
  0x4f   :  { %636 = vmatprep.subr.bf16.mxu0 %v791_v0  ;;  %v644_v19 = vpack.c.bf16 %v269_v18, %v268_v17  ;;  %v357_v21 = vld [vmem:[%s993_s8] sm:$0xff]  ;;  %v266_v28 = vld [vmem:[#allocation5] sm:$0xff]  ;;  %v359_v31 = vld [vmem:[%s993_s8 + $0x10] sm:$0xf]  ;;  %vm456_vm10 = vcmask 195584  }
  0x50   :  { %642 = vmatpush3.bf16.msra.mxu1 %v641_v11  ;;  %v647_v23 = vpack.c.bf16 %v358_v22, %v357_v21  ;;  %v557_v24 = vld [vmem:[%s990_s5] ss:$0 sm:$0xff]  ;;  %v447_v33 = vld [vmem:[%s995_s10 + $0x8] sm:$0xff]  ;;  %v448_v40 = vld [vmem:[%s995_s10 + $0x10] sm:$0xff] }
  0x51   :  { %643 = vmatprep.subr.bf16.mxu1 %v791_v0  ;;  %v446_v32 = vld [vmem:[%s995_s10] sm:$0xff]  ;;  %s795_s10 = smov [#allocation10]  }
  0x52   :  { %639 = vmatpush3.bf16.msk.msra.mxu0 %vm638_vm3, %v637_v7  ;;  %v650_v34 = vpack.c.bf16 %v447_v33, %v446_v32  ;;  %v559_v35 = vld [vmem:[#allocation8] ss:$0 sm:$0xff] }
  0x53   :  { %646 = vmatprep.subr.bf16.mxu0 %v791_v0  ;;  %v562_v41 = vld [vmem:[%s994_s9] ss:$0 sm:$0xff]  ;;  %s543_s9 = sshll.u32 %s795_s10, 4  ;;  %s544_s9 = int_to_ptr.vmem [resolvable:$true] %s543_s9 }
  0x54   :  { %v565_v46 = vld [vmem:[%s996_s11] ss:$0 sm:$0xff]  ;;  %s755_s19 = scalar_lea.vmem %s544_s9, 128  ;;  %p760_p5 = scmp.lt.s32.totalorder %s544_s9, %s544_s9 }
  0x55   :  { %597 = vmatmul.mubr.msk.f32.vlgmr.msra.gmra.mrb[0].mxu0 %vm103_vm4, %v91_v8  ;;  %p756_p4 = scmp.ne.s32.totalorder %s544_s9, %s755_s19  ;;  %p761_p6 = scmp.lt.s32.totalorder %s755_s19, %s755_s19 }
  0x56   :  { %621 = vmatprep.mubr.msk.f32.mxu0 %vm792_vm0, %v793_v1  ;;  %648 = vmatpush3.bf16.msra.mxu0 %v647_v23 }
  0x57   :  { %619 = vmatprep.subr.mxu0 %v793_v1  ;;  %p762_p7 = por %p761_p6, %p760_p5 }
  0x59   :  { %p763_p8 = pnand %p762_p7, %p756_p4 }
  0x5a   :  { %620 = vmatpush3.msk.msra.mxu0 %vm371_vm8, %v359_v31 }
 0x128   :  { %v177_v13 = vpop.f32.mrb[0].mxu0 }
 0x129   :  { %v178_v14 = vadd.f32 %v554_v12, %v177_v13  ;;  %v598_v15 = vpop.f32.mrb[1].mxu0 }
 0x12b   :  { %v181_v16 = vmax.f32 %v178_v14, 0.0 }
 0x12d   :  { %604 = vmatmul.mubr.msk.f32.vlgmr.msra.gmra.mrb[0].mxu1 %vm191_vm5, %v181_v16 }
 0x12e   :  { %612 = vmatprep.mubr.msk.f32.mxu1 %vm792_vm0, %v793_v1  ;;  %645 = vmatpush3.bf16.msra.mxu1 %v644_v19 }
 0x12f   :  { %610 = vmatprep.subr.mxu1 %v793_v1 }
 0x132   :  { %611 = vmatpush3.msk.msra.mxu1 %vm282_vm6, %v270_v20 }
 0x133   :  { %649 = vmatprep.subr.bf16.mxu1 %v791_v0 }
 0x200   :  { %v261_v25 = vpop.f32.mrb[0].mxu1 }
 0x201   :  { %v262_v26 = vadd.f32 %v557_v24, %v261_v25  ;;  %v605_v27 = vpop.f32.mrb[1].mxu1 }
 0x203   :  { %v265_v29 = vmax.f32 %v262_v26, 0.0 }
 0x205   :  { %v267_v30 = vmul.f32 %v266_v28, %v265_v29 }
 0x207   :  { %613 = vmatmul.mubr.msk.f32.vlgmr.msra.gmra.mrb[2].mxu1 %vm278_vm7, %v267_v30 }
 0x208   :  { %630 = vmatprep.mubr.msk.f32.mxu1 %vm792_vm0, %v793_v1  ;;  %651 = vmatpush3.bf16.msra.mxu1 %v650_v34 }
 0x209   :  { %628 = vmatprep.subr.mxu1 %v793_v1 }
 0x20c   :  { %629 = vmatpush3.msra.mxu1 %v448_v40 }
 0x2da   :  { %v352_v36 = vpop.f32.mrb[2].mxu1 }
 0x2db   :  { %v353_v37 = vadd.f32 %v559_v35, %v352_v36  ;;  %v614_v38 = vpop.f32.mrb[3].mxu1 }
 0x2dd   :  { %v356_v39 = vmax.f32 %v353_v37, 0.0 }
 0x2df   :  { %622 = vmatmul.mubr.msk.f32.vlgmr.msra.gmra.mrb[2].mxu0 %vm367_vm9, %v356_v39 }
 0x3b2   :  { %v441_v42 = vpop.f32.mrb[2].mxu0 }
 0x3b3   :  { %v442_v43 = vadd.f32 %v562_v41, %v441_v42  ;;  %v623_v44 = vpop.f32.mrb[3].mxu0 }
 0x3b5   :  { %v445_v45 = vmax.f32 %v442_v43, 0.0 }
 0x3b7   :  { %631 = vmatmul.mubr.msk.f32.vlgmr.msra.gmra.mrb[4].mxu1 %vm456_vm10, %v445_v45 }
 0x48a   :  { %v526_v47 = vpop.f32.mrb[4].mxu1 }
 0x48b   :  { %v527_v48 = vadd.f32 %v565_v46, %v526_v47  ;;  %v632_v49 = vpop.f32.mrb[5].mxu1 }
 0x48d   :  { %v567_v50 = vmul.f32 -1.442695, %v527_v48 }
 0x48f   :  { %663 = vpow2.f32 %v567_v50 }
 0x499   :  { %v664_v51 = vpop.eup %663 }
 0x49a   :  { %v533_v52 = vadd.f32 1.0, %v664_v51 }
 0x49c   :  { %665 = vrcp.f32 %v533_v52 }
 0x4a6   :  { %v666_v53 = vpop.eup %665 }
 0x4a7   :  { %536 = vst [vmem:[#allocation10] sm:$0xff] %v666_v53 }
 0x4a8   :  { %766 = shalt.err (!%p763_p8)
}
 0x4a9   :  { %s767_s20 = scalar_lea.hbm %s997_s12, 128 }
 0x4aa   :  { %p768_p9 = scmp.ne.s32.totalorder %s997_s12, %s767_s20  ;;  %p771_p10 = scmp.lt.u32.totalorder %s767_s20, %s997_s12 }
 0x4ac   :  { %p773_p11 = pnand %p771_p10, %p768_p9 }
 0x4ae   :  { %776 = shalt.err (!%p773_p11)
}
 0x4af   :  { %546 = dma.vmem_to_hbm [thread:$0]  %s544_s9, 128, %s997_s12, [#allocation4]  }
 0x4b0   :  { %783 = dma.done.wait [#allocation4], 128  }
 0x4b1   :  { %784 = vsyncadd [#allocation4], 4294967168 }
 0x4b2   :  { %550 = vsyncpa [#allocation3], 1 }
 0x4b3   :  { %551 = vsyncpa [#allocation6], 1 }
 0x4b4   :  { %552 = vsyncpa [#allocation9], 1 }
 0x4b5   :  { %553 = vsyncpa [#allocation4], 1 }

</bundles_post_ra>
